<compile_context>
chip_gen: v6e
topology: v6e:2x2x1
jax: 0.10.0
libtpu: 0.0.40
codegen_flags: <defaults>
</compile_context>

<pallas_src>
import jax
import jax.numpy as jnp
import numpy as np
from jax.experimental import pallas as pl
from jax.experimental.pallas import tpu as pltpu


def pairwise_kernel(x_ref, xi_ref, wa_ref, wb_ref, wo_ref, out_ref, pb_ref):
    # x_ref : (TB, N,  DpC)  full fused [mm_pad | coords] block (j side)
    # xi_ref: (TB, TI, DpC)  i-tile slice of the same fused input (i side)
    # wa/wb : (DpC, Hh)      block-diagonal fused input projections
    # wo    : (Hh, Dp)       stacked output projection (lane-dense columns)
    # out   : (TB, TI, Dp)
    # pb_ref: (TB*N, Hh) f32 scratch — j-side projection cached across i-tiles
    TB, N, DpC = x_ref.shape
    TI = xi_ref.shape[1]
    Dp = out_ref.shape[-1]
    Hh = wa_ref.shape[-1]

    # j-side projection depends only on the batch block: compute once per batch
    # block (first i-tile) and reuse for all subsequent i-tiles.
    @pl.when(pl.program_id(1) == 0)
    def _():
        xj = x_ref[...].reshape(TB * N, DpC)
        pb_ref[...] = jnp.dot(xj, wb_ref[...], preferred_element_type=jnp.float32)

    xi = xi_ref[...].reshape(TB * TI, DpC)                                  # (TB*TI, DpC)
    pa = jnp.dot(xi, wa_ref[...], preferred_element_type=jnp.float32)       # (TB*TI, Hh)
    pb = pb_ref[...]                                                        # (TB*N,  Hh)

    # Pairwise low-rank bilinear term for all (b, i, j) in this tile, then one
    # big MXU matmul (M = TB*TI*N) for the fused output projection.
    h = (pa.reshape(TB, TI, 1, Hh) *
         pb.reshape(TB, 1, N, Hh)).reshape(TB * TI * N, Hh)                 # (TB*TI*N, Hh)
    rij = jnp.dot(h, wo_ref[...], preferred_element_type=jnp.float32)       # (TB*TI*N, Dp)

    # max over j (agg['type'] == 'max'), residual add, single dense store.
    mm_new = jnp.max(rij.reshape(TB * TI, N, Dp), axis=1)                   # (TB*TI, Dp)
    mm_new = mm_new + xi[:, :Dp].astype(jnp.float32)                        # residual
    out_ref[...] = mm_new.reshape(TB, TI, Dp).astype(out_ref.dtype)


def _step_vmem_bytes(TB, TI, N, DpC, Dp, Hh):
    """Rough per-grid-step VMEM footprint (f32) used to pick tile sizes."""
    f32 = 4
    io = 2 * TB * N * DpC + 2 * TB * TI * DpC + 2 * TB * TI * Dp   # double-buffered blocks
    w = 2 * (2 * DpC * Hh + Hh * Dp)                               # weights (double-buffered)
    scratch = TB * N * Hh                                          # cached pb
    interm = TB * TI * Hh + TB * TI * N * Hh + TB * TI * N * Dp    # pa, h, rij
    return f32 * (io + w + scratch + interm)


def _choose_tiles(B, N, DpC, Dp, Hh, max_tb, budget_bytes):
    tb_cands = [d for d in range(min(B, max_tb), 0, -1) if B % d == 0] or [1]
    # TI must satisfy the (8,128) block constraint on the second-to-last dim.
    ti_cands = [d for d in range(N, 0, -1) if N % d == 0 and (d == N or d % 8 == 0)]
    best = None
    for tb in tb_cands:
        for ti in ti_cands:
            if _step_vmem_bytes(tb, ti, N, DpC, Dp, Hh) <= budget_bytes:
                score = (tb * ti, ti)
                if best is None or score > best[0]:
                    best = (score, tb, ti)
    if best is not None:
        return best[1], best[2]
    # Nothing fits the budget: smallest legal tiles, best effort.
    return 1, ti_cands[-1]


def pairwise_forward(mm, coords, params, *, max_tb=8, vmem_budget_bytes=20 * 2**20):
    B, N, D = mm.shape
    C = coords.shape[-1]
    waf, wbf, wof, wac, wbc, woc = params
    H, Hc = waf.shape[1], wac.shape[1]
    Hh = H + Hc
    dt = mm.dtype

    # Lane-dense padded feature width (output stores become full vsts).
    Dp = 128 * pl.cdiv(D, 128)
    DpC = Dp + C
    TB, TI = _choose_tiles(B, N, DpC, Dp, Hh, max_tb, vmem_budget_bytes)

    # Fused input: x = [mm (padded to Dp) | coords]  -> (B, N, Dp + C)
    mm_p = jnp.pad(mm, ((0, 0), (0, 0), (0, Dp - D)))
    x = jnp.concatenate([mm_p, coords.astype(dt)], axis=-1)

    # Block-diagonal fused input projections and stacked output projection.
    wa = jnp.zeros((DpC, Hh), dt).at[:D, :H].set(waf).at[Dp:, H:].set(wac)
    wb = jnp.zeros((DpC, Hh), dt).at[:D, :H].set(wbf).at[Dp:, H:].set(wbc)
    wo = jnp.zeros((Hh, Dp), dt).at[:H, :D].set(wof).at[H:, :D].set(woc)

    out_p = pl.pallas_call(
        pairwise_kernel,
        out_shape=jax.ShapeDtypeStruct((B, N, Dp), dt),
        grid_spec=pltpu.PrefetchScalarGridSpec(
            num_scalar_prefetch=0,
            grid=(B // TB, N // TI),
            in_specs=[
                pl.BlockSpec((TB, N, DpC), lambda b, i: (b, 0, 0)),    # full-N (j side)
                pl.BlockSpec((TB, TI, DpC), lambda b, i: (b, i, 0)),   # i-tile (i side)
                pl.BlockSpec((DpC, Hh), lambda b, i: (0, 0)),          # Wa (block-diag)
                pl.BlockSpec((DpC, Hh), lambda b, i: (0, 0)),          # Wb (block-diag)
                pl.BlockSpec((Hh, Dp), lambda b, i: (0, 0)),           # Wo (stacked)
            ],
            out_specs=pl.BlockSpec((TB, TI, Dp), lambda b, i: (b, i, 0)),
            scratch_shapes=[pltpu.VMEM((TB * N, Hh), jnp.float32)],
        ),
        compiler_params=pltpu.CompilerParams(
            dimension_semantics=("parallel", "arbitrary")),
    )(x, x, wa, wb, wo)

    # Strip lane padding (exact original semantics).
    return out_p[..., :D]


def pairwise_ref(mm, coords, params):
    """Pure-JAX reference with identical semantics (for validation)."""
    waf, wbf, wof, wac, wbc, woc = params
    pa_f = mm @ waf
    pb_f = mm @ wbf
    pa_c = coords @ wac
    pb_c = coords @ wbc
    hf = pa_f[:, :, None, :] * pb_f[:, None, :, :]         # (B, N, N, H)
    hc = pa_c[:, :, None, :] * pb_c[:, None, :, :]         # (B, N, N, Hc)
    rij = (jnp.einsum('bijh,hd->bijd', hf, wof)
           + jnp.einsum('bijh,hd->bijd', hc, woc))         # (B, N, N, D)
    mm_new = rij.max(axis=2)                               # max over j  (agg['type']=='max')
    return mm_new + mm                                     # residual


if __name__ == "__main__":
    B, N, D, C, H, Hc = 2, 8, 32, 4, 32, 16

    key = jax.random.PRNGKey(0)
    ks = jax.random.split(key, 8)
    mm = jax.random.normal(ks[0], (B, N, D), jnp.float32)
    coords = jax.random.normal(ks[1], (B, N, C), jnp.float32)

    scale = 0.1
    waf = scale * jax.random.normal(ks[2], (D, H), jnp.float32)
    wbf = scale * jax.random.normal(ks[3], (D, H), jnp.float32)
    wof = scale * jax.random.normal(ks[4], (H, D), jnp.float32)
    wac = scale * jax.random.normal(ks[5], (C, Hc), jnp.float32)
    wbc = scale * jax.random.normal(ks[6], (C, Hc), jnp.float32)
    woc = scale * jax.random.normal(ks[7], (Hc, D), jnp.float32)
    params = (waf, wbf, wof, wac, wbc, woc)

    out = pairwise_forward(mm, coords, params)
    out = jax.block_until_ready(out)

    ref = pairwise_ref(mm, coords, params)
    np.testing.assert_allclose(np.asarray(out), np.asarray(ref), rtol=1e-5, atol=1e-5)

    print("KERNEL_OK")
</pallas_src>

<mosaic_0001>
module attributes {stable_mosaic.version = 11 : i64} {
  func.func @pairwise_kernel(%arg0: i32, %arg1: i32, %arg2: memref<2x8x132xf32, #tpu.memory_space<vmem>>, %arg3: memref<2x8x132xf32, #tpu.memory_space<vmem>>, %arg4: memref<132x48xf32, #tpu.memory_space<vmem>>, %arg5: memref<132x48xf32, #tpu.memory_space<vmem>>, %arg6: memref<48x128xf32, #tpu.memory_space<vmem>>, %arg7: memref<2x8x128xf32, #tpu.memory_space<vmem>>, %arg8: memref<16x48xf32, #tpu.memory_space<vmem>>) attributes {dimension_semantics = [#tpu.dimension_semantics<parallel>, #tpu.dimension_semantics<arbitrary>], iteration_bounds = array<i64: 1, 1>, scalar_prefetch = 0 : i64, scratch_operands = 1 : i64, tpu.core_type = #tpu.core_type<tc>, window_params = [{transform_indices = @transform_0, window_bounds = array<i64: 2, 8, 132>}, {transform_indices = @transform_1, window_bounds = array<i64: 2, 8, 132>}, {pipeline_mode = #tpu.pipeline_mode<synchronous>, transform_indices = @transform_2, window_bounds = array<i64: 132, 48>}, {pipeline_mode = #tpu.pipeline_mode<synchronous>, transform_indices = @transform_3, window_bounds = array<i64: 132, 48>}, {pipeline_mode = #tpu.pipeline_mode<synchronous>, transform_indices = @transform_4, window_bounds = array<i64: 48, 128>}, {transform_indices = @transform_5, window_bounds = array<i64: 2, 8, 128>}]} {
    %c0_i32 = arith.constant 0 : i32
    %0 = arith.cmpi eq, %arg1, %c0_i32 : i32
    %1 = arith.extui %0 : i1 to i32
    %c0_i32_0 = arith.constant 0 : i32
    %2 = arith.cmpi ne, %1, %c0_i32_0 : i32
    scf.if %2 {
      %c0_14 = arith.constant 0 : index
      %c0_15 = arith.constant 0 : index
      %c0_16 = arith.constant 0 : index
      %22 = vector.load %arg2[%c0_14, %c0_15, %c0_16] : memref<2x8x132xf32, #tpu.memory_space<vmem>>, vector<2x8x132xf32>
      %23 = vector.shape_cast %22 : vector<2x8x132xf32> to vector<16x132xf32>
      %c0_17 = arith.constant 0 : index
      %c0_18 = arith.constant 0 : index
      %24 = vector.load %arg5[%c0_17, %c0_18] : memref<132x48xf32, #tpu.memory_space<vmem>>, vector<132x48xf32>
      %cst_19 = arith.constant dense<0.000000e+00> : vector<16x48xf32>
      %25 = tpu.matmul %23, %24, %cst_19 {dimension_numbers = #tpu.dot_dimension_numbers<[1], [0], [0], [1], [0, 0, 1, 1], [], []>} : vector<16x132xf32>, vector<132x48xf32>, vector<16x48xf32> -> vector<16x48xf32>
      %c0_20 = arith.constant 0 : index
      %c0_21 = arith.constant 0 : index
      %26 = vector.load %arg8[%c0_20, %c0_21] : memref<16x48xf32, #tpu.memory_space<vmem>>, vector<16x48xf32>
      tpu.vector_store %arg8[%c0_20, %c0_21], %25 {strides = array<i32>} : memref<16x48xf32, #tpu.memory_space<vmem>>, vector<16x48xf32>,
    } else {
    }
    %c0 = arith.constant 0 : index
    %c0_1 = arith.constant 0 : index
    %c0_2 = arith.constant 0 : index
    %3 = vector.load %arg3[%c0, %c0_1, %c0_2] : memref<2x8x132xf32, #tpu.memory_space<vmem>>, vector<2x8x132xf32>
    %4 = vector.shape_cast %3 : vector<2x8x132xf32> to vector<16x132xf32>
    %c0_3 = arith.constant 0 : index
    %c0_4 = arith.constant 0 : index
    %5 = vector.load %arg4[%c0_3, %c0_4] : memref<132x48xf32, #tpu.memory_space<vmem>>, vector<132x48xf32>
    %cst = arith.constant dense<0.000000e+00> : vector<16x48xf32>
    %6 = tpu.matmul %4, %5, %cst {dimension_numbers = #tpu.dot_dimension_numbers<[1], [0], [0], [1], [0, 0, 1, 1], [], []>} : vector<16x132xf32>, vector<132x48xf32>, vector<16x48xf32> -> vector<16x48xf32>
    %c0_5 = arith.constant 0 : index
    %c0_6 = arith.constant 0 : index
    %7 = vector.load %arg8[%c0_5, %c0_6] : memref<16x48xf32, #tpu.memory_space<vmem>>, vector<16x48xf32>
    %8 = vector.shape_cast %6 : vector<16x48xf32> to vector<2x8x1x48xf32>
    %9 = vector.shape_cast %7 : vector<16x48xf32> to vector<2x1x8x48xf32>
    %10 = vector.broadcast %8 : vector<2x8x1x48xf32> to vector<2x8x8x48xf32>
    %11 = vector.broadcast %9 : vector<2x1x8x48xf32> to vector<2x8x8x48xf32>
    %12 = arith.mulf %10, %11 : vector<2x8x8x48xf32>
    %13 = vector.shape_cast %12 : vector<2x8x8x48xf32> to vector<128x48xf32>
    %c0_7 = arith.constant 0 : index
    %c0_8 = arith.constant 0 : index
    %14 = vector.load %arg6[%c0_7, %c0_8] : memref<48x128xf32, #tpu.memory_space<vmem>>, vector<48x128xf32>
    %cst_9 = arith.constant dense<0.000000e+00> : vector<128x128xf32>
    %15 = tpu.matmul %13, %14, %cst_9 {dimension_numbers = #tpu.dot_dimension_numbers<[1], [0], [0], [1], [0, 0, 1, 1], [], []>} : vector<128x48xf32>, vector<48x128xf32>, vector<128x128xf32> -> vector<128x128xf32>
    %16 = vector.shape_cast %15 : vector<128x128xf32> to vector<16x8x128xf32>
    %cst_10 = arith.constant dense<0xFF800000> : vector<16x128xf32>
    %17 = vector.multi_reduction <maximumf>, %16, %cst_10 [1] : vector<16x8x128xf32> to vector<16x128xf32>
    %18 = vector.extract_strided_slice %4 {offsets = [0, 0], sizes = [16, 128], strides = [1, 1]} : vector<16x132xf32> to vector<16x128xf32>
    %19 = arith.addf %17, %18 : vector<16x128xf32>
    %20 = vector.shape_cast %19 : vector<16x128xf32> to vector<2x8x128xf32>
    %c0_11 = arith.constant 0 : index
    %c0_12 = arith.constant 0 : index
    %c0_13 = arith.constant 0 : index
    %21 = vector.load %arg7[%c0_11, %c0_12, %c0_13] : memref<2x8x128xf32, #tpu.memory_space<vmem>>, vector<2x8x128xf32>
    tpu.vector_store %arg7[%c0_11, %c0_12, %c0_13], %20 {strides = array<i32>} : memref<2x8x128xf32, #tpu.memory_space<vmem>>, vector<2x8x128xf32>,
    return
  }
  func.func @transform_0(%arg0: i32, %arg1: i32) -> (i32, i32, i32) {
    %c0_i32 = arith.constant 0 : i32
    %c0_i32_0 = arith.constant 0 : i32
    %c0_i32_1 = arith.constant 0 : i32
    return %arg0, %c0_i32, %c0_i32_0 : i32, i32, i32
  }
  func.func @transform_1(%arg0: i32, %arg1: i32) -> (i32, i32, i32) {
    %c0_i32 = arith.constant 0 : i32
    %c0_i32_0 = arith.constant 0 : i32
    return %arg0, %arg1, %c0_i32 : i32, i32, i32
  }
  func.func @transform_2(%arg0: i32, %arg1: i32) -> (i32, i32) {
    %c0_i32 = arith.constant 0 : i32
    %c0_i32_0 = arith.constant 0 : i32
    %c0_i32_1 = arith.constant 0 : i32
    return %c0_i32, %c0_i32_0 : i32, i32
  }
  func.func @transform_3(%arg0: i32, %arg1: i32) -> (i32, i32) {
    %c0_i32 = arith.constant 0 : i32
    %c0_i32_0 = arith.constant 0 : i32
    %c0_i32_1 = arith.constant 0 : i32
    return %c0_i32, %c0_i32_0 : i32, i32
  }
  func.func @transform_4(%arg0: i32, %arg1: i32) -> (i32, i32) {
    %c0_i32 = arith.constant 0 : i32
    %c0_i32_0 = arith.constant 0 : i32
    %c0_i32_1 = arith.constant 0 : i32
    return %c0_i32, %c0_i32_0 : i32, i32
  }
  func.func @transform_5(%arg0: i32, %arg1: i32) -> (i32, i32, i32) {
    %c0_i32 = arith.constant 0 : i32
    %c0_i32_0 = arith.constant 0 : i32
    return %arg0, %arg1, %c0_i32 : i32, i32, i32
  }
}

</mosaic_0001>

<bundles_post_ra>
// kernel: tpu_custom_call.1
= control target key start
LH: loop header
LB: loop body
LE: loop exit
PB: predicated region body
PF: predicated region fallthrough
CT: control target
= control target key end

     0   :  { %v974_v2 = vmov 0.0   ;;  %s1294_s0 = inlined_call_operand.vmem [shape: f32[2,8,132], index: 0, kind: input, shape index: {}]   ;;  %s1295_s1 = inlined_call_operand.vmem [shape: f32[2,8,132], index: 1, kind: input, shape index: {}]   ;;  %s1296_s2 = inlined_call_operand.vmem [shape: f32[132,48], index: 2, kind: input, shape index: {}]   ;;  %s1297_s3 = inlined_call_operand.vmem [shape: f32[132,48], index: 3, kind: input, shape index: {}]   ;;  %s1298_s4 = inlined_call_operand.vmem [shape: f32[48,128], index: 4, kind: input, shape index: {}]   ;;  %s1299_s5 = inlined_call_operand.hbm [shape: f32[2,8,128], index: 5, kind: output, shape index: {}]  }
   0x1   :  { %v44_v0 = vld [vmem:[%s1297_s3 + $0x78] sm:$0xff]  ;;  %57 = vmatprep.subr.mxu0 %v974_v2  ;;  %167 = vmatprep.subr.mxu1 %v974_v2  ;;  %v43_v3 = vld [vmem:[%s1297_s3 + $0x70] sm:$0xff]  ;;  %v42_v5 = vld [vmem:[%s1297_s3 + $0x68] sm:$0xff] }
   0x2   :  { %v154_v1 = vld [vmem:[%s1296_s2 + $0x78] sm:$0xff]  ;;  %v153_v4 = vld [vmem:[%s1296_s2 + $0x70] sm:$0xff]  ;;  %58 = vmatpush1.msra.mxu0 %v44_v0  ;;  %v152_v6 = vld [vmem:[%s1296_s2 + $0x68] sm:$0xff] }
   0x3   :  { %168 = vmatpush1.msra.mxu1 %v154_v1  ;;  %59 = vmatprep.subr.mxu0 %v974_v2  ;;  %v41_v7 = vld [vmem:[%s1297_s3 + $0x60] sm:$0xff]  ;;  %v40_v9 = vld [vmem:[%s1297_s3 + $0x58] sm:$0xff]  ;;  %v39_v11 = vld [vmem:[%s1297_s3 + $0x50] sm:$0xff] }
   0x4   :  { %169 = vmatprep.subr.mxu1 %v974_v2  ;;  %60 = vmatpush1.msra.mxu0 %v43_v3  ;;  %v151_v8 = vld [vmem:[%s1296_s2 + $0x60] sm:$0xff]  ;;  %v150_v10 = vld [vmem:[%s1296_s2 + $0x58] sm:$0xff]  ;;  %v149_v12 = vld [vmem:[%s1296_s2 + $0x50] sm:$0xff] }
   0x5   :  { %170 = vmatpush1.msra.mxu1 %v153_v4  ;;  %61 = vmatprep.subr.mxu0 %v974_v2  ;;  %v38_v13 = vld [vmem:[%s1297_s3 + $0x48] sm:$0xff]  ;;  %v37_v15 = vld [vmem:[%s1297_s3 + $0x40] sm:$0xff] }
   0x6   :  { %171 = vmatprep.subr.mxu1 %v974_v2  ;;  %62 = vmatpush1.msra.mxu0 %v42_v5  ;;  %v148_v14 = vld [vmem:[%s1296_s2 + $0x48] sm:$0xff]  ;;  %v147_v16 = vld [vmem:[%s1296_s2 + $0x40] sm:$0xff] }
   0x7   :  { %172 = vmatpush1.msra.mxu1 %v152_v6  ;;  %63 = vmatprep.subr.mxu0 %v974_v2 }
   0x8   :  { %173 = vmatprep.subr.mxu1 %v974_v2  ;;  %64 = vmatpush1.msra.mxu0 %v41_v7 }
   0x9   :  { %174 = vmatpush1.msra.mxu1 %v151_v8  ;;  %65 = vmatprep.subr.mxu0 %v974_v2 }
   0xa   :  { %175 = vmatprep.subr.mxu1 %v974_v2  ;;  %66 = vmatpush1.msra.mxu0 %v40_v9 }
   0xb   :  { %176 = vmatpush1.msra.mxu1 %v150_v10  ;;  %67 = vmatprep.subr.mxu0 %v974_v2 }
   0xc   :  { %177 = vmatprep.subr.mxu1 %v974_v2  ;;  %68 = vmatpush1.msra.mxu0 %v39_v11 }
   0xd   :  { %178 = vmatpush1.msra.mxu1 %v149_v12  ;;  %69 = vmatprep.subr.mxu0 %v974_v2 }
   0xe   :  { %179 = vmatprep.subr.mxu1 %v974_v2  ;;  %70 = vmatpush1.msra.mxu0 %v38_v13 }
   0xf   :  { %180 = vmatpush1.msra.mxu1 %v148_v14 }
  0x10   :  { %10 = vsyncpa [#allocation4], 0  ;;  %71 = vmatprep.subr.mxu0 %v974_v2  ;;  %181 = vmatprep.subr.mxu1 %v974_v2  ;;  %v36_v17 = vld [vmem:[%s1297_s3 + $0x38] sm:$0xff]  ;;  %v35_v19 = vld [vmem:[%s1297_s3 + $0x30] sm:$0xff]  ;;  %vm53_vm0 = vcmask 1043456   ;;  %vm46_vm1 = vcmask 31744   ;;  %v250_v51 = vlaneseq }
  0x11   :  { %v146_v18 = vld [vmem:[%s1296_s2 + $0x38] sm:$0xff]  ;;  %72 = vmatpush1.msra.mxu0 %v37_v15  ;;  %182 = vmatpush1.msra.mxu1 %v147_v16  ;;  %v145_v20 = vld [vmem:[%s1296_s2 + $0x30] sm:$0xff]  ;;  %v34_v21 = vld [vmem:[%s1297_s3 + $0x28] sm:$0xff]  ;;  %v975_v49 = vmov 1966171168   ;;  %vm132_vm2 = vcmask 392192  }
  0x12   :  { %73 = vmatprep.subr.mxu0 %v974_v2  ;;  %183 = vmatprep.subr.mxu1 %v974_v2  ;;  %v144_v22 = vld [vmem:[%s1296_s2 + $0x28] sm:$0xff]  ;;  %v33_v23 = vld [vmem:[%s1297_s3 + $0x20] sm:$0xff]  ;;  %v32_v25 = vld [vmem:[%s1297_s3 + $0x18] sm:$0xff]  ;;  %v248_v50 = vunpack.c.l.s4 %v975_v49  ;;  %v251_v53 = vshrl.u32 %v250_v51, 7  ;;  %vm801_vm3 = vcmask 1041409   ;;  %vm804_vm4 = vcmask 1042434  }
  0x13   :  { %74 = vmatpush1.msra.mxu0 %v36_v17  ;;  %184 = vmatpush1.msra.mxu1 %v146_v18  ;;  %v143_v24 = vld [vmem:[%s1296_s2 + $0x20] sm:$0xff]  ;;  %v142_v26 = vld [vmem:[%s1296_s2 + $0x18] sm:$0xff]  ;;  %v31_v27 = vld [vmem:[%s1297_s3 + $0x10] sm:$0xff]  ;;  %vm807_vm5 = vcmask 1043459   ;;  %vm810_vm6 = vcmask 1044484   ;;  %vm813_vm7 = vcmask 1045509  }
  0x14   :  { %75 = vmatprep.subr.mxu0 %v974_v2  ;;  %185 = vmatprep.subr.mxu1 %v974_v2  ;;  %v141_v28 = vld [vmem:[%s1296_s2 + $0x10] sm:$0xff]  ;;  %v30_v29 = vld [vmem:[%s1297_s3 + $0x8] sm:$0xff]  ;;  %v29_v31 = vld [vmem:[%s1297_s3] sm:$0xff]  ;;  %v249_v52 = vunpack.c.0.s8 %v248_v50  ;;  %v1198_v59 = vsub.s32 0, %v251_v53  ;;  %vm816_vm8 = vcmask 1046534   ;;  %vm819_vm9 = vcmask 1047559  }
  0x15   :  { %76 = vmatpush1.msra.mxu0 %v35_v19  ;;  %186 = vmatpush1.msra.mxu1 %v145_v20  ;;  %v140_v30 = vld [vmem:[%s1296_s2 + $0x8] sm:$0xff]  ;;  %v139_v32 = vld [vmem:[%s1296_s2] sm:$0xff]  ;;  %v28_v39 = vld [vmem:[%s1294_s0 + $0x18] sm:$0xff] }
  0x16   :  { %77 = vmatprep.subr.mxu0 %v974_v2  ;;  %187 = vmatprep.subr.mxu1 %v974_v2  ;;  %v45_v33 = vld [vmem:[%s1297_s3 + $0x80] sm:$0xf]  ;;  %v26_v34 = vld [vmem:[%s1294_s0 + $0x8] sm:$0xff]  ;;  %v138_v40 = vld [vmem:[%s1295_s1 + $0x18] sm:$0xff]  ;;  %v252_v54 = vsub.s32 %v249_v52, %v251_v53 }
  0x17   :  { %78 = vmatpush1.msra.mxu0 %v34_v21  ;;  %188 = vmatpush1.msra.mxu1 %v144_v22  ;;  %v155_v35 = vld [vmem:[%s1296_s2 + $0x80] sm:$0xf]  ;;  %v136_v36 = vld [vmem:[%s1295_s1 + $0x8] sm:$0xff]  ;;  %v27_v41 = vld [vmem:[%s1294_s0 + $0x10] sm:$0xff] }
  0x18   :  { %79 = vmatprep.subr.mxu0 %v974_v2  ;;  %189 = vmatprep.subr.mxu1 %v974_v2  ;;  %v25_v37 = vld [vmem:[%s1294_s0] sm:$0xff]  ;;  %v1176_v42 = vld [vmem:[%s1295_s1 + $0x10] sm:$0xff]  ;;  %v445_v43 = vld [vmem:[%s1298_s4 + $0x28] sm:$0xff] }
  0x19   :  { %80 = vmatpush1.msra.mxu0 %v33_v23  ;;  %190 = vmatpush1.msra.mxu1 %v143_v24  ;;  %v1157_v38 = vld [vmem:[%s1295_s1] sm:$0xff]  ;;  %v443_v45 = vld [vmem:[%s1298_s4 + $0x18] sm:$0xff]  ;;  %v442_v46 = vld [vmem:[%s1298_s4 + $0x10] sm:$0xff] }
  0x1a   :  { %81 = vmatprep.subr.mxu0 %v974_v2  ;;  %191 = vmatprep.subr.mxu1 %v974_v2  ;;  %v444_v44 = vld [vmem:[%s1298_s4 + $0x20] sm:$0xff]  ;;  %v441_v47 = vld [vmem:[%s1298_s4 + $0x8] sm:$0xff] }
  0x1b   :  { %82 = vmatpush1.msra.mxu0 %v32_v25  ;;  %192 = vmatpush1.msra.mxu1 %v142_v26  ;;  %v440_v48 = vld [vmem:[%s1298_s4] sm:$0xff]  ;;  %s976_s4 = smov [#allocation3]  }
  0x1c   :  { %83 = vmatprep.subr.mxu0 %v974_v2  ;;  %193 = vmatprep.subr.mxu1 %v974_v2  ;;  %s844_s10 = sshll.u32 %s976_s4, 4  ;;  %s845_s10 = int_to_ptr.vmem [resolvable:$true] %s844_s10 }
  0x1d   :  { %84 = vmatpush1.msra.mxu0 %v31_v27  ;;  %194 = vmatpush1.msra.mxu1 %v141_v28  ;;  %s952_s11 = scalar_lea.vmem %s845_s10, 256  ;;  %p957_p1 = scmp.lt.s32.totalorder %s845_s10, %s845_s10 }
  0x1e   :  { %85 = vmatprep.subr.mxu0 %v974_v2  ;;  %195 = vmatprep.subr.mxu1 %v974_v2  ;;  %p953_p0 = scmp.ne.s32.totalorder %s845_s10, %s952_s11  ;;  %p958_p2 = scmp.lt.s32.totalorder %s952_s11, %s952_s11 }
  0x1f   :  { %86 = vmatpush1.msra.mxu0 %v30_v29  ;;  %196 = vmatpush1.msra.mxu1 %v140_v30 }
  0x20   :  { %87 = vmatprep.subr.mxu0 %v974_v2  ;;  %197 = vmatprep.subr.mxu1 %v974_v2  ;;  %p959_p3 = por %p958_p2, %p957_p1 }
  0x21   :  { %88 = vmatpush1.msra.mxu0 %v29_v31  ;;  %198 = vmatpush1.msra.mxu1 %v139_v32 }
  0x22   :  { %119 = vmatprep.subr.mxu0 %v974_v2  ;;  %229 = vmatprep.subr.mxu1 %v974_v2  ;;  %p960_p4 = pnand %p959_p3, %p953_p0 }
  0x23   :  { %855 = vmatpush2.msk.msra.mxu0 %vm53_vm0, %v45_v33  ;;  %856 = vmatprep.mubr.msk.f32.mxu0 %vm46_vm1, %v26_v34 }
  0x24   :  { %858 = vmatpush2.msk.msra.mxu1 %vm53_vm0, %v155_v35  ;;  %859 = vmatprep.mubr.msk.f32.mxu1 %vm46_vm1, %v136_v36 }
  0x25   :  { %122 = vmatmul.mubr.f32.vlgmr.msra.gmra.mxu0 %v25_v37  ;;  %232 = vmatmul.mubr.f32.vlgmr.msra.gmra.mxu1 %v1157_v38 }
  0x26   :  { %857 = vmatprep.mubr.msk.f32.mxu0 %vm46_vm1, %v28_v39  ;;  %860 = vmatprep.mubr.msk.f32.mxu1 %vm46_vm1, %v138_v40 }
  0x27   :  { %899 = vmatprep.subr.mxu0 %v445_v43  ;;  %935 = vmatprep.subr.mxu1 %v445_v43 }
  0x28   :  { %900 = vmatpush3.msra.mxu0 %v445_v43  ;;  %941 = vmatpush3.msra.mxu1 %v445_v43 }
  0x29   :  { %127 = vmatmul.mubr.f32.gmra.mxu0 %v27_v41  ;;  %237 = vmatmul.mubr.f32.gmra.mxu1 %v1176_v42 }
  0x2a   :  { %901 = vmatprep.subr.mxu0 %v444_v44  ;;  %936 = vmatprep.subr.mxu1 %v444_v44 }
  0x2b   :  { %902 = vmatpush3.msra.mxu0 %v444_v44  ;;  %942 = vmatpush3.msra.mxu1 %v444_v44 }
  0x2c   :  { %903 = vmatprep.subr.mxu0 %v443_v45  ;;  %937 = vmatprep.subr.mxu1 %v443_v45 }
  0x2d   :  { %904 = vmatpush3.msra.mxu0 %v443_v45  ;;  %943 = vmatpush3.msra.mxu1 %v443_v45 }
  0x2e   :  { %905 = vmatprep.subr.mxu0 %v442_v46  ;;  %938 = vmatprep.subr.mxu1 %v442_v46 }
  0x2f   :  { %906 = vmatpush3.msra.mxu0 %v442_v46  ;;  %944 = vmatpush3.msra.mxu1 %v442_v46 }
  0x30   :  { %907 = vmatprep.subr.mxu0 %v441_v47  ;;  %939 = vmatprep.subr.mxu1 %v441_v47 }
  0x31   :  { %908 = vmatpush3.msra.mxu0 %v441_v47  ;;  %945 = vmatpush3.msra.mxu1 %v441_v47 }
  0x32   :  { %909 = vmatprep.subr.mxu0 %v440_v48  ;;  %940 = vmatprep.subr.mxu1 %v440_v48 }
  0x33   :  { %910 = vmatpush3.msra.mxu0 %v440_v48  ;;  %946 = vmatpush3.msra.mxu1 %v440_v48 }
  0xe5   :  { %v123_v55 = vpop.f32.mrf.mxu0  ;;  %v233_v56 = vpop.f32.mrf.mxu1 }
  0xe6   :  { %133 = vst.msk [vmem:[#allocation2] sm:$0xff] %vm132_vm2, %v123_v55  ;;  %v246_v57 = vcombine.high %v233_v56, %v233_v56  ;;  %v253_v58 = vrot.slane %v233_v56, %v252_v54 }
  0xe7   :  { %v125_v60 = vpop.f32.mrf.mxu0  ;;  %v235_v61 = vpop.f32.mrf.mxu1 }
  0xe8   :  { %v260_v62 = vrot.slane %v246_v57, %v252_v54  ;;  %v261_v63 = vcombine.high %v253_v58, %v253_v58  ;;  %v269_v0 = vrot.slane %v253_v58, %v252_v54 }
  0xe9   :  { %v128_v1 = vpop.f32.mrf.mxu0  ;;  %v238_v2 = vpop.f32.mrf.mxu1 }
  0xea   :  { %v262_v3 = vcombine.high %v260_v62, %v260_v62  ;;  %v276_v4 = vrot.slane %v260_v62, %v252_v54  ;;  %v283_v5 = vrot.slane %v261_v63, %v252_v54  ;;  %v291_v6 = vcombine.high %v269_v0, %v269_v0  ;;  %134 = vst.msk [vmem:[#allocation2 + $0x8] sm:$0xff] %vm132_vm2, %v128_v1 }
  0xeb   :  { %v347_v7 = vrot.slane %v269_v0, %v1198_v59  ;;  %v295_v8 = vcombine.high %v238_v2, %v238_v2  ;;  %v302_v9 = vrot.slane %v238_v2, %v252_v54  ;;  %v130_v10 = vpop.f32.mrf.mxu0  ;;  %v240_v11 = vpop.f32.mrf.mxu1 }
  0xec   :  { %v293_v12 = vcombine.high %v283_v5, %v283_v5  ;;  %v351_v13 = vrot.slane %v283_v5, %v1198_v59  ;;  %v290_v15 = vrot.slane %v262_v3, %v252_v54  ;;  %v355_v16 = vrot.slane %v291_v6, %v1198_v59 }
  0xed   :  { %v242_v14 = vld [vmem:[#allocation2] sm:$0xff]  ;;  %v309_v17 = vrot.slane %v295_v8, %v252_v54  ;;  %v310_v18 = vcombine.high %v302_v9, %v302_v9  ;;  %v363_v19 = vrot.slane %v276_v4, %v1198_v59  ;;  %v318_v21 = vrot.slane %v302_v9, %v252_v54 }
  0xee   :  { %v425_v20 = vmul.f32 %v351_v13, %v242_v14  ;;  %v424_v22 = vmul.f32 %v347_v7, %v242_v14  ;;  %v292_v23 = vcombine.high %v276_v4, %v276_v4  ;;  %v426_v29 = vmul.f32 %v355_v16, %v242_v14 }
  0xef   :  { %v311_v24 = vcombine.high %v309_v17, %v309_v17  ;;  %v325_v25 = vrot.slane %v309_v17, %v252_v54  ;;  %v332_v26 = vrot.slane %v310_v18, %v252_v54  ;;  %v340_v27 = vcombine.high %v318_v21, %v318_v21 }
  0xf0   :  { %v379_v28 = vrot.slane %v318_v21, %v1198_v59  ;;  %911 = vmatprep.mubr.msk.f32.mxu0 %vm132_vm2, %v424_v22  ;;  %v359_v30 = vrot.slane %v293_v12, %v1198_v59  ;;  %v294_v31 = vcombine.high %v290_v15, %v290_v15  ;;  %v428_v39 = vmul.f32 %v363_v19, %v242_v14 }
  0xf1   :  { %v243_v32 = vld [vmem:[#allocation2 + $0x8] sm:$0xff]  ;;  %v342_v33 = vcombine.high %v332_v26, %v332_v26  ;;  %v383_v34 = vrot.slane %v332_v26, %v1198_v59  ;;  %912 = vmatmul.mubr.msk.f32.vlgmr.msra.gmra.mxu0 %vm132_vm2, %v425_v20  ;;  %v339_v35 = vrot.slane %v311_v24, %v252_v54  ;;  %v387_v36 = vrot.slane %v340_v27, %v1198_v59 }
  0xf2   :  { %914 = vmatprep.mubr.msk.f32.mxu0 %vm132_vm2, %v426_v29  ;;  %v432_v37 = vmul.f32 %v379_v28, %v243_v32  ;;  %v427_v41 = vmul.f32 %v359_v30, %v242_v14  ;;  %v367_v43 = vrot.slane %v290_v15, %v1198_v59  ;;  %v341_v45 = vcombine.high %v325_v25, %v325_v25 }
  0xf3   :  { %v433_v40 = vmul.f32 %v383_v34, %v243_v32  ;;  %v391_v44 = vrot.slane %v342_v33, %v1198_v59  ;;  %v395_v46 = vrot.slane %v325_v25, %v1198_v59  ;;  %v434_v47 = vmul.f32 %v387_v36, %v243_v32 }
  0xf4   :  { %923 = vmatprep.mubr.msk.f32.mxu1 %vm132_vm2, %v432_v37  ;;  %v371_v48 = vrot.slane %v292_v23, %v1198_v59  ;;  %v343_v49 = vcombine.high %v339_v35, %v339_v35  ;;  %v429_v50 = vmul.f32 %v367_v43, %v242_v14  ;;  %v375_v52 = vrot.slane %v294_v31, %v1198_v59 }
  0xf5   :  { %915 = vmatmul.mubr.msk.f32.gmra.mxu0 %vm132_vm2, %v427_v41  ;;  %924 = vmatmul.mubr.msk.f32.vlgmr.msra.gmra.mxu1 %vm132_vm2, %v433_v40  ;;  %v435_v51 = vmul.f32 %v391_v44, %v243_v32  ;;  %v399_v53 = vrot.slane %v339_v35, %v1198_v59  ;;  %v436_v55 = vmul.f32 %v395_v46, %v243_v32  ;;  %v738_v4 = vrot.slane %v1157_v38, 1 }
  0xf6   :  { %917 = vmatprep.mubr.msk.f32.mxu0 %vm132_vm2, %v428_v39  ;;  %926 = vmatprep.mubr.msk.f32.mxu1 %vm132_vm2, %v434_v47  ;;  %v430_v54 = vmul.f32 %v371_v48, %v242_v14  ;;  %v403_v56 = vrot.slane %v341_v45, %v1198_v59  ;;  %v431_v57 = vmul.f32 %v375_v52, %v242_v14  ;;  %v740_v10 = vrot.slane %v1157_v38, 3 }
  0xf7   :  { %v437_v58 = vmul.f32 %v399_v53, %v243_v32  ;;  %v407_v60 = vrot.slane %v343_v49, %v1198_v59  ;;  %v745_v11 = vrot.slane %v1176_v42, 1  ;;  %v739_v13 = vrot.slane %v1157_v38, 2 }
  0xf8   :  { %v438_v61 = vmul.f32 %v403_v56, %v243_v32  ;;  %v742_v15 = vrot.slane %v1157_v38, 5  ;;  %v747_v24 = vrot.slane %v1176_v42, 3  ;;  %v741_v25 = vrot.slane %v1157_v38, 4 }
  0xf9   :  { %918 = vmatmul.mubr.msk.f32.gmra.mxu0 %vm132_vm2, %v429_v50  ;;  %927 = vmatmul.mubr.msk.f32.gmra.mxu1 %vm132_vm2, %v435_v51  ;;  %v439_v62 = vmul.f32 %v407_v60, %v243_v32 }
  0xfa   :  { %920 = vmatprep.mubr.msk.f32.mxu0 %vm132_vm2, %v430_v54  ;;  %929 = vmatprep.mubr.msk.f32.mxu1 %vm132_vm2, %v436_v55 }
  0xfd   :  { %921 = vmatmul.mubr.msk.f32.gmra.mxu0 %vm132_vm2, %v431_v57  ;;  %930 = vmatmul.mubr.msk.f32.gmra.mxu1 %vm132_vm2, %v437_v58  ;;  %v746_v57 = vrot.slane %v1176_v42, 2  ;;  %v744_v58 = vrot.slane %v1157_v38, 7 }
  0xfe   :  { %932 = vmatprep.mubr.msk.f32.mxu1 %vm132_vm2, %v438_v61 }
 0x101   :  { %933 = vmatmul.mubr.msk.f32.gmra.mxu1 %vm132_vm2, %v439_v62 }
 0x1b1   :  { %v913_v63 = vpop.f32.mrf.mxu0 }
 0x1b2   :  { %v646_v0 = vrot.slane %v913_v63, 4 }
 0x1b3   :  { %v561_v1 = vpop.f32.mrf.mxu0 }
 0x1b4   :  { %v647_v2 = vmax.f32 %v913_v63, %v646_v0  ;;  %v640_v3 = vrot.slane %v561_v1, 4 }
 0x1b5   :  { %v916_v5 = vpop.f32.mrf.mxu0  ;;  %v925_v6 = vpop.f32.mrf.mxu1 }
 0x1b6   :  { %v648_v59 = vrot.slane %v647_v2, 2  ;;  %v641_v7 = vmax.f32 %v561_v1, %v640_v3  ;;  %v658_v8 = vrot.slane %v916_v5, 4  ;;  %v694_v9 = vrot.slane %v925_v6, 4 }
 0x1b7   :  { %v571_v12 = vpop.f32.mrf.mxu0  ;;  %v601_v14 = vpop.f32.mrf.mxu1 }
 0x1b8   :  { %v649_v16 = vmax.f32 %v647_v2, %v648_v59  ;;  %v642_v17 = vrot.slane %v641_v7, 2  ;;  %v659_v18 = vmax.f32 %v916_v5, %v658_v8  ;;  %v695_v19 = vmax.f32 %v925_v6, %v694_v9 }
 0x1b9   :  { %v652_v20 = vrot.slane %v571_v12, 4  ;;  %v688_v21 = vrot.slane %v601_v14, 4  ;;  %v919_v22 = vpop.f32.mrf.mxu0  ;;  %v928_v23 = vpop.f32.mrf.mxu1  ;;  %v743_v5 = vrot.slane %v1157_v38, 6 }
 0x1ba   :  { %v650_v26 = vrot.slane %v649_v16, 1  ;;  %v643_v27 = vmax.f32 %v641_v7, %v642_v17  ;;  %v660_v28 = vrot.slane %v659_v18, 2  ;;  %v696_v29 = vrot.slane %v695_v19, 2 }
 0x1bb   :  { %v653_v30 = vmax.f32 %v571_v12, %v652_v20  ;;  %v689_v31 = vmax.f32 %v601_v14, %v688_v21  ;;  %v670_v32 = vrot.slane %v919_v22, 4  ;;  %v706_v33 = vrot.slane %v928_v23, 4  ;;  %v611_v34 = vpop.f32.mrf.mxu1  ;;  %v581_v50 = vpop.f32.mrf.mxu0 }
 0x1bc   :  { %v651_v35 = vmax.f32 %v649_v16, %v650_v26  ;;  %v644_v36 = vrot.slane %v643_v27, 1  ;;  %v661_v37 = vmax.f32 %v659_v18, %v660_v28  ;;  %v697_v39 = vmax.f32 %v695_v19, %v696_v29 }
 0x1bd   :  { %v654_v40 = vrot.slane %v653_v30, 2  ;;  %v690_v41 = vrot.slane %v689_v31, 2  ;;  %v671_v43 = vmax.f32 %v919_v22, %v670_v32  ;;  %v707_v44 = vmax.f32 %v928_v23, %v706_v33  ;;  %v931_v45 = vpop.f32.mrf.mxu1  ;;  %v922_v3 = vpop.f32.mrf.mxu0 }
 0x1be   :  { %v769_v46 = vadd.f32 %v738_v4, %v651_v35  ;;  %v645_v47 = vmax.f32 %v643_v27, %v644_v36  ;;  %v662_v48 = vrot.slane %v661_v37, 1  ;;  %v698_v49 = vrot.slane %v697_v39, 1 }
 0x1bf   :  { %v655_v51 = vmax.f32 %v653_v30, %v654_v40  ;;  %v691_v52 = vmax.f32 %v689_v31, %v690_v41  ;;  %v672_v53 = vrot.slane %v671_v43, 2  ;;  %v708_v54 = vrot.slane %v707_v44, 2  ;;  %v621_v0 = vpop.f32.mrf.mxu1  ;;  %v591_v26 = vpop.f32.mrf.mxu0 }
 0x1c0   :  { %v663_v55 = vmax.f32 %v661_v37, %v662_v48  ;;  %v699_v56 = vmax.f32 %v697_v39, %v698_v49  ;;  %v800_v1 = vrot.slane %v769_v46, 7  ;;  %v664_v2 = vrot.slane %v581_v50, 4 }
 0x1c1   :  { %v656_v60 = vrot.slane %v655_v51, 1  ;;  %v692_v61 = vrot.slane %v691_v52, 1  ;;  %v673_v62 = vmax.f32 %v671_v43, %v672_v53  ;;  %v709_v63 = vmax.f32 %v707_v44, %v708_v54  ;;  %v934_v21 = vpop.f32.mrf.mxu1 }
 0x1c2   :  { %v749_v4 = vrot.slane %v1176_v42, 5  ;;  %v768_v6 = vadd.f32 %v645_v47, %v1157_v38  ;;  %v1245_v59 = vadd.f32 %v740_v10, %v663_v55  ;;  %v1247_v7 = vadd.f32 %v745_v11, %v699_v56 }
 0x1c3   :  { %v657_v8 = vmax.f32 %v655_v51, %v656_v60  ;;  %v665_v9 = vmax.f32 %v581_v50, %v664_v2  ;;  %v700_v12 = vrot.slane %v611_v34, 4  ;;  %v748_v14 = vrot.slane %v1176_v42, 4  ;;  %v631_v39 = vpop.f32.mrf.mxu1 }
 0x1c4   :  { %v751_v16 = vrot.slane %v1176_v42, 7  ;;  %v693_v18 = vmax.f32 %v691_v52, %v692_v61  ;;  %v674_v19 = vrot.slane %v673_v62, 1  ;;  %v710_v20 = vrot.slane %v709_v63, 1 }
 0x1c5   :  { %v770_v17 = vadd.f32 %v739_v13, %v657_v8  ;;  %v666_v22 = vrot.slane %v665_v9, 2  ;;  %v701_v10 = vmax.f32 %v611_v34, %v700_v12  ;;  %v682_v23 = vrot.slane %v922_v3, 4 }
 0x1c6   :  { %v718_v11 = vrot.slane %v931_v45, 4  ;;  %v802_v27 = vsel %vm801_vm3, %v800_v1, %v768_v6  ;;  %v806_v28 = vrot.slane %v1245_v59, 5  ;;  %v821_v29 = vrot.slane %v1247_v7, 7 }
 0x1c7   :  { %v750_v30 = vrot.slane %v1176_v42, 6  ;;  %v667_v31 = vmax.f32 %v665_v9, %v666_v22  ;;  %v702_v13 = vrot.slane %v701_v10, 2  ;;  %v683_v32 = vmax.f32 %v922_v3, %v682_v23 }
 0x1c8   :  { %v719_v33 = vmax.f32 %v931_v45, %v718_v11  ;;  %v776_v35 = vadd.f32 %v693_v18, %v1176_v42  ;;  %v675_v36 = vmax.f32 %v673_v62, %v674_v19  ;;  %v711_v37 = vmax.f32 %v709_v63, %v710_v20 }
 0x1c9   :  { %v676_v34 = vrot.slane %v591_v26, 4  ;;  %v803_v40 = vrot.slane %v770_v17, 6  ;;  %v668_v41 = vrot.slane %v667_v31, 1  ;;  %v703_v43 = vmax.f32 %v701_v10, %v702_v13 }
 0x1ca   :  { %v684_v44 = vrot.slane %v683_v32, 2  ;;  %v720_v46 = vrot.slane %v719_v33, 2  ;;  %v712_v48 = vrot.slane %v621_v0, 4  ;;  %v730_v49 = vrot.slane %v934_v21, 4 }
 0x1cb   :  { %v677_v47 = vmax.f32 %v591_v26, %v676_v34  ;;  %v669_v50 = vmax.f32 %v667_v31, %v668_v41  ;;  %v704_v51 = vrot.slane %v703_v43, 1  ;;  %v724_v45 = vrot.slane %v631_v39, 4 }
 0x1cc   :  { %v685_v52 = vmax.f32 %v683_v32, %v684_v44  ;;  %v721_v53 = vmax.f32 %v719_v33, %v720_v46  ;;  %v713_v55 = vmax.f32 %v621_v0, %v712_v48  ;;  %v731_v56 = vmax.f32 %v934_v21, %v730_v49 }
 0x1cd   :  { %v678_v54 = vrot.slane %v677_v47, 2  ;;  %v772_v60 = vadd.f32 %v741_v25, %v669_v50  ;;  %v705_v61 = vmax.f32 %v703_v43, %v704_v51  ;;  %v725_v63 = vmax.f32 %v631_v39, %v724_v45 }
 0x1ce   :  { %v686_v62 = vrot.slane %v685_v52, 1  ;;  %v722_v1 = vrot.slane %v721_v53, 1  ;;  %v714_v3 = vrot.slane %v713_v55, 2  ;;  %v732_v6 = vrot.slane %v731_v56, 2 }
 0x1cf   :  { %v679_v2 = vmax.f32 %v677_v47, %v678_v54  ;;  %v805_v59 = vsel %vm804_vm4, %v803_v40, %v802_v27  ;;  %v778_v7 = vadd.f32 %v746_v57, %v705_v61  ;;  %v726_v0 = vrot.slane %v725_v63, 2 }
 0x1d0   :  { %v687_v8 = vmax.f32 %v685_v52, %v686_v62  ;;  %v809_v9 = vrot.slane %v772_v60, 4  ;;  %v715_v17 = vmax.f32 %v713_v55, %v714_v3  ;;  %v733_v18 = vmax.f32 %v731_v56, %v732_v6 }
 0x1d1   :  { %v680_v12 = vrot.slane %v679_v2, 1  ;;  %v773_v25 = vadd.f32 %v742_v15, %v675_v36  ;;  %v779_v19 = vadd.f32 %v747_v24, %v711_v37  ;;  %v723_v20 = vmax.f32 %v721_v53, %v722_v1 }
 0x1d2   :  { %v727_v21 = vmax.f32 %v725_v63, %v726_v0  ;;  %v823_v22 = vrot.slane %v778_v7, 6  ;;  %v716_v23 = vrot.slane %v715_v17, 1  ;;  %v734_v11 = vrot.slane %v733_v18, 1 }
 0x1d3   :  { %v681_v10 = vmax.f32 %v679_v2, %v680_v12  ;;  %v808_v57 = vsel %vm807_vm5, %v806_v28, %v805_v59  ;;  %v775_v26 = vadd.f32 %v744_v58, %v687_v8  ;;  %v822_v31 = vsel %vm801_vm3, %v821_v29, %v776_v35 }
 0x1d4   :  { %v728_v27 = vrot.slane %v727_v21, 1  ;;  %v811_v15 = vsel %vm810_vm6, %v809_v9, %v808_v57  ;;  %v717_v13 = vmax.f32 %v715_v17, %v716_v23  ;;  %v812_v32 = vrot.slane %v773_v25, 3 }
 0x1d5   :  { %v774_v24 = vadd.f32 %v743_v5, %v681_v10  ;;  %v781_v33 = vadd.f32 %v749_v4, %v723_v20  ;;  %v735_v36 = vmax.f32 %v733_v18, %v734_v11  ;;  %v825_v28 = vrot.slane %v779_v19, 5 }
 0x1d6   :  { %v729_v37 = vmax.f32 %v727_v21, %v728_v27  ;;  %v824_v34 = vsel %vm804_vm4, %v823_v22, %v822_v31  ;;  %v780_v39 = vadd.f32 %v748_v14, %v717_v13  ;;  %v818_v29 = vrot.slane %v775_v26, 1 }
 0x1d7   :  { %v815_v58 = vrot.slane %v774_v24, 2  ;;  %v783_v35 = vadd.f32 %v751_v16, %v735_v36  ;;  %v814_v5 = vsel %vm813_vm7, %v812_v32, %v811_v15  ;;  %v829_v41 = vrot.slane %v781_v33, 3 }
 0x1d8   :  { %v782_v38 = vadd.f32 %v750_v30, %v729_v37  ;;  %v827_v40 = vrot.slane %v780_v39, 4  ;;  %v826_v43 = vsel %vm807_vm5, %v825_v28, %v824_v34 }
 0x1d9   :  { %v817_v4 = vsel %vm816_vm8, %v815_v58, %v814_v5  ;;  %v833_v16 = vrot.slane %v783_v35, 1 }
 0x1da   :  { %v831_v44 = vrot.slane %v782_v38, 2  ;;  %v820_v46 = vsel %vm819_vm9, %v818_v29, %v817_v4  ;;  %v828_v14 = vsel %vm810_vm6, %v827_v40, %v826_v43 }
 0x1db   :  { %837 = vst [vmem:[#allocation3] sm:$0xff] %v820_v46  ;;  %v830_v42 = vsel %vm813_vm7, %v829_v41, %v828_v14 }
 0x1dc   :  { %v832_v30 = vsel %vm816_vm8, %v831_v44, %v830_v42 }
 0x1dd   :  { %v834_v47 = vsel %vm819_vm9, %v833_v16, %v832_v30 }
 0x1de   :  { %838 = vst [vmem:[#allocation3 + $0x8] sm:$0xff] %v834_v47 }
 0x1df   :  { %963 = shalt.err (!%p960_p4)
}
 0x1e0   :  { %s977_s12 = smov 128   ;;  %s978_s13 = smov 8  }
 0x1e1   :  { %850 = dma.vmem_to_hbm [thread:$0]  %s845_s10, 256, %s1299_s5, [#allocation4], %s977_s12, %s977_s12, %s978_s13  }
 0x1e2   :  { %972 = dma.done.wait [#allocation4], 256  }
 0x1e3   :  { %973 = vsyncadd [#allocation4], 4294967040 }
 0x1e4   :  { %854 = vsyncpa [#allocation4], 1 }

</bundles_post_ra>
